<compile_context>
chip_gen: v7x
topology: tpu7x:2x2x1
jax: 0.10.0
libtpu: 0.0.40
codegen_flags: <defaults>
</compile_context>

<pallas_src>
import jax
import jax.numpy as jnp
import numpy as np
from jax.experimental import pallas as pl
from jax.experimental.pallas import tpu as pltpu


_LANES = 512           # lane-dense last dim (multiple of 128)
_MAX_TILE_ROWS = 1024  # 1024 x 512 x 4 B = 2 MiB per f32 tile


def _copy_kernel(x_ref, o_ref):
    # Placeholder hot path: pure pass-through of the fused feature slab.
    o_ref[...] = x_ref[...]


def _fuse_lane_dense(frame, event):
    """Concatenate both feature maps into one lane-dense 2-D slab.

    Returns (slab[rows, _LANES], n_valid) where rows is a multiple of the
    tile height whenever tiling is needed (zero-padded tail otherwise).
    """
    flat = jnp.concatenate([frame.reshape(-1), event.reshape(-1)])
    n = flat.size
    rows = pl.cdiv(n, _LANES)
    if rows > _MAX_TILE_ROWS:
        rows = pl.cdiv(rows, _MAX_TILE_ROWS) * _MAX_TILE_ROWS
    padded = rows * _LANES
    if padded != n:
        flat = jnp.pad(flat, (0, padded - n))
    return flat.reshape(rows, _LANES), n


def _streaming_identity(slab):
    """Tiled, lane-dense, megacore-parallel identity stream over the fused slab."""
    rows, lanes = slab.shape
    tile_rows = min(rows, _MAX_TILE_ROWS)
    grid = (rows // tile_rows,)
    return pl.pallas_call(
        _copy_kernel,
        out_shape=jax.ShapeDtypeStruct(slab.shape, slab.dtype),
        grid=grid,
        in_specs=[pl.BlockSpec((tile_rows, lanes), lambda i: (i, 0))],
        out_specs=pl.BlockSpec((tile_rows, lanes), lambda i: (i, 0)),
        # Output aliases the input: no fresh HBM allocation for a no-op stream.
        input_output_aliases={0: 0},
        compiler_params=pltpu.CompilerParams(
            dimension_semantics=("parallel",),
        ),
    )(slab)


class CrossMambaPallas:
    """JAX/Pallas mirror of the (empty) PyTorch Cross_mamba module."""

    def __init__(self, img_feature_channels, ev_feature_channels, output_channels):
        # The PyTorch __init__ creates no parameters / submodules.
        self.img_feature_channels = img_feature_channels
        self.ev_feature_channels = ev_feature_channels
        self.output_channels = output_channels

    def forward(self, frame_coarse_feature, event_coarse_feature):
        # The reference forward performs NO tensor computation: it prints an
        # empty line and returns None.  The previous identity pallas_call,
        # block_until_ready and host-sync asserts were dead work and have been
        # removed (highest-value change in the performance review).
        del frame_coarse_feature, event_coarse_feature
        print()          # matches `print()` in the reference forward
        return None      # reference forward returns None

    __call__ = forward


if __name__ == "__main__":
    key = jax.random.PRNGKey(0)
    k_frame, k_event = jax.random.split(key)

    # Small NCHW shapes consistent with "coarse feature" inputs.
    frame_coarse_feature = jax.random.normal(k_frame, (2, 4, 16, 16), dtype=jnp.float32)
    event_coarse_feature = jax.random.normal(k_event, (2, 4, 16, 16), dtype=jnp.float32)

    # Exercise the Pallas scaffolding once: fused, lane-dense, tiled stream.
    slab, _ = _fuse_lane_dense(frame_coarse_feature, event_coarse_feature)
    expected = np.asarray(slab)  # copy to host before the aliased (donated) call
    out = _streaming_identity(slab)
    out = jax.block_until_ready(out)
    np.testing.assert_array_equal(np.asarray(out), expected)

    # Module forward mirrors the reference exactly (print + return None).
    module = CrossMambaPallas(
        img_feature_channels=4, ev_feature_channels=4, output_channels=4
    )
    result = module(frame_coarse_feature, event_coarse_feature)
    assert result is None  # same as the PyTorch module

    print("KERNEL_OK")
</pallas_src>

<mosaic_0001>
module attributes {stable_mosaic.version = 11 : i64} {
  func.func @_copy_kernel(%arg0: i32, %arg1: memref<8x512xf32, #tpu.memory_space<vmem>>, %arg2: memref<8x512xf32, #tpu.memory_space<vmem>>) attributes {dimension_semantics = [#tpu.dimension_semantics<parallel>], iteration_bounds = array<i64: 1>, scalar_prefetch = 0 : i64, scratch_operands = 0 : i64, tpu.core_type = #tpu.core_type<tc>, window_params = [{transform_indices = @transform_0, window_bounds = array<i64: 8, 512>}, {transform_indices = @transform_1, window_bounds = array<i64: 8, 512>}]} {
    %c0 = arith.constant 0 : index
    %c0_0 = arith.constant 0 : index
    %0 = vector.load %arg1[%c0, %c0_0] : memref<8x512xf32, #tpu.memory_space<vmem>>, vector<8x512xf32>
    %c0_1 = arith.constant 0 : index
    %c0_2 = arith.constant 0 : index
    %1 = vector.load %arg2[%c0_1, %c0_2] : memref<8x512xf32, #tpu.memory_space<vmem>>, vector<8x512xf32>
    tpu.vector_store %arg2[%c0_1, %c0_2], %0 {strides = array<i32>} : memref<8x512xf32, #tpu.memory_space<vmem>>, vector<8x512xf32>,
    return
  }
  func.func @transform_0(%arg0: i32) -> (i32, i32) {
    %c0_i32 = arith.constant 0 : i32
    %c0_i32_0 = arith.constant 0 : i32
    return %arg0, %c0_i32 : i32, i32
  }
  func.func @transform_1(%arg0: i32) -> (i32, i32) {
    %c0_i32 = arith.constant 0 : i32
    %c0_i32_0 = arith.constant 0 : i32
    return %arg0, %c0_i32 : i32, i32
  }
}

</mosaic_0001>

<bundles_post_ra>
// kernel: tpu_custom_call.1
= control target key start
LH: loop header
LB: loop body
LE: loop exit
PB: predicated region body
PF: predicated region fallthrough
CT: control target
= control target key end

     0   :  { %6 = vsyncpa [#allocation3], 0  ;;  %s130_s0 = inlined_call_operand.hbm [shape: f32[8,512], index: 0, kind: input, shape index: {}, may-alias: {0,1}]   ;;  %s131_s1 = inlined_call_operand.hbm [shape: f32[8,512], index: 1, kind: output, shape index: {}, may-alias: {0,1}]  }
   0x1   :  { %7 = vsyncpa [#allocation4], 0  ;;  %s94_s6 = smov [#allocation2]   ;;  %s46_s10 = scalar_lea.hbm %s130_s0, 512 }
   0x2   :  { %s14_s7 = sshll.u32 %s94_s6, 4  ;;  %p47_p0 = scmp.ne.s32.totalorder %s130_s0, %s46_s10  ;;  %s15_s7 = int_to_ptr.vmem [resolvable:$true] %s14_s7 }
   0x3   :  { %p50_p1 = scmp.lt.u32.totalorder %s46_s10, %s130_s0 }
   0x5   :  { %p52_p2 = pnand %p50_p1, %p47_p0 }
   0x7   :  { %55 = shalt.err (!%p52_p2)
}
   0x8   :  { %s56_s15 = scalar_lea.vmem %s15_s7, 512  ;;  %p61_p4 = scmp.lt.s32.totalorder %s15_s7, %s15_s7 }
   0x9   :  { %p57_p3 = scmp.ne.s32.totalorder %s15_s7, %s56_s15  ;;  %p62_p5 = scmp.lt.s32.totalorder %s56_s15, %s56_s15 }
   0xb   :  { %p63_p6 = por %p62_p5, %p61_p4 }
   0xd   :  { %p64_p7 = pnand %p63_p6, %p57_p3 }
   0xf   :  { %67 = shalt.err (!%p64_p7)
}
  0x10   :  { %17 = dma.hbm_to_vmem [thread:$0]  %s130_s0, 512, %s15_s7, [#allocation3]  }
  0x11   :  { %90 = dma.done.wait [#allocation3], 512  }
  0x12   :  { %91 = vsyncadd [#allocation3], 4294966784  ;;  %s95_s18 = smov [#allocation5]   ;;  %v21_v0 = vld [vmem:[#allocation2] sm:$0xff]  ;;  %v22_v1 = vld [vmem:[#allocation2 + $0x8] sm:$0xff] }
  0x13   :  { %s35_s19 = sshll.u32 %s95_s18, 4  ;;  %v23_v2 = vld [vmem:[#allocation2 + $0x10] sm:$0xff]  ;;  %25 = vst [vmem:[#allocation5] sm:$0xff] %v21_v0  ;;  %26 = vst [vmem:[#allocation5 + $0x8] sm:$0xff] %v22_v1  ;;  %v24_v3 = vld [vmem:[#allocation2 + $0x18] sm:$0xff]  ;;  %s36_s19 = int_to_ptr.vmem [resolvable:$true] %s35_s19 }
  0x14   :  { %27 = vst [vmem:[#allocation5 + $0x10] sm:$0xff] %v23_v2  ;;  %28 = vst [vmem:[#allocation5 + $0x18] sm:$0xff] %v24_v3  ;;  %s68_s20 = scalar_lea.vmem %s36_s19, 512  ;;  %p73_p9 = scmp.lt.s32.totalorder %s36_s19, %s36_s19 }
  0x15   :  { %p69_p8 = scmp.ne.s32.totalorder %s36_s19, %s68_s20  ;;  %p74_p10 = scmp.lt.s32.totalorder %s68_s20, %s68_s20 }
  0x17   :  { %p75_p11 = por %p74_p10, %p73_p9 }
  0x19   :  { %p76_p12 = pnand %p75_p11, %p69_p8 }
  0x1b   :  { %79 = shalt.err (!%p76_p12)
}
  0x1c   :  { %s80_s22 = scalar_lea.hbm %s131_s1, 512 }
  0x1d   :  { %p81_p13 = scmp.ne.s32.totalorder %s131_s1, %s80_s22  ;;  %p84_p0 = scmp.lt.u32.totalorder %s80_s22, %s131_s1 }
  0x1f   :  { %p86_p1 = pnand %p84_p0, %p81_p13 }
  0x21   :  { %89 = shalt.err (!%p86_p1)
}
  0x22   :  { %38 = dma.vmem_to_hbm [thread:$0]  %s36_s19, 512, %s131_s1, [#allocation4]  }
  0x23   :  { %92 = dma.done.wait [#allocation4], 512  }
  0x24   :  { %93 = vsyncadd [#allocation4], 4294966784 }
  0x25   :  { %42 = vsyncpa [#allocation3], 1 }
  0x26   :  { %43 = vsyncpa [#allocation4], 1 }

</bundles_post_ra>
